<compile_context>
chip_gen: v6e
topology: v6e:2x2x1
jax: 0.10.0
libtpu: 0.0.40
codegen_flags: <defaults>
</compile_context>

<pallas_src>
import jax
import jax.numpy as jnp
from jax.experimental import pallas as pl
from jax.experimental.pallas import tpu as pltpu


_LANE = 128
_SPLIT_MIN = 128                      # only split a single-tile batch if each half has >=128 rows
_VMEM_ACT_BUDGET = 12 * 1024 * 1024   # keep double-buffered activations under v5e's 16 MiB default


def _round_up(x, m):
    return (x + m - 1) // m * m


# ----------------------------------------------------------------------------
# Kernel: one batch tile of  sigmoid(relu(z @ W1 + b1) @ W2 + b2)
# ----------------------------------------------------------------------------
def _generator_kernel(z_ref, w1_ref, b1_ref, w2_ref, b2_ref, o_ref):
    w1 = w1_ref[...]
    x = z_ref[...].astype(w1.dtype)           # bf16 MXU path: cast tiny z in-kernel (wrapper stays copy-free)
    h = jnp.dot(x, w1, preferred_element_type=jnp.float32)
    h = jnp.maximum(h + b1_ref[...], 0.0)     # (TB, Hp) + (1, Hp); f32 epilogue on every generation
    h = h.astype(w2_ref.dtype)
    o = jnp.dot(h, w2_ref[...], preferred_element_type=jnp.float32)
    o = o + b2_ref[...]                       # (TB, OUTp) + (1, OUTp)
    # sigmoid(x) == 0.5 * tanh(0.5 * x) + 0.5 : single EUP op, exact identity.
    o_ref[...] = (0.5 * jnp.tanh(0.5 * o) + 0.5).astype(o_ref.dtype)


# ----------------------------------------------------------------------------
# One-time parameter preparation (hoisted out of the per-forward path)
# ----------------------------------------------------------------------------
def prepare_params(w1, b1, w2, b2, *, mxu_dtype=jnp.float32):
    """Pad hidden / out_feat to multiples of 128 and cast MXU operands ONCE.

    Zero padding is numerically neutral: ReLU(z @ 0 + 0) = 0 feeds zero W2
    rows, and padded b2 columns are sliced off by the wrapper. Biases stay f32
    regardless of mxu_dtype (v5e VPU/EUP have no bf16). Call this once at
    parameter-load time and reuse the result for every forward call.
    """
    z_size, hidden = w1.shape
    out_feat = w2.shape[1]
    assert b1.shape == (hidden,) and b2.shape == (out_feat,)

    hid_p = _round_up(hidden, _LANE)    # 400 -> 512
    out_p = _round_up(out_feat, _LANE)  # 256 -> 256

    w1_p = jnp.zeros((z_size, hid_p), mxu_dtype).at[:, :hidden].set(w1.astype(mxu_dtype))
    b1_p = jnp.zeros((1, hid_p), jnp.float32).at[:, :hidden].set(b1.astype(jnp.float32))
    w2_p = jnp.zeros((hid_p, out_p), mxu_dtype).at[:hidden, :out_feat].set(w2.astype(mxu_dtype))
    b2_p = jnp.zeros((1, out_p), jnp.float32).at[:, :out_feat].set(b2.astype(jnp.float32))
    return w1_p, b1_p, w2_p, b2_p


def _choose_batch_tile(batch, batch_tile, bytes_per_row):
    """Pick the batch tile: big (amortize per-step overhead), >=2 blocks when
    the batch is large enough (v7x has 2 TCs), capped for v5e's scoped VMEM."""
    cap = max(8, (_VMEM_ACT_BUDGET // bytes_per_row) // 8 * 8)
    batch_tile = min(batch_tile, cap)
    b8 = _round_up(max(batch, 1), 8)
    if b8 <= batch_tile:
        if b8 >= 2 * _SPLIT_MIN:
            return _round_up(pl.cdiv(b8, 2), 8)   # 2 blocks -> both v7x TensorCores
        return b8                                 # tiny batch: single block
    return batch_tile


# ----------------------------------------------------------------------------
# Forward wrapper (no weight copies, no z padding copy)
# ----------------------------------------------------------------------------
def generator_mnist_forward(z, params, *, channel, dim,
                            batch_tile=2048, out_dtype=jnp.float32):
    """z: (B, z_size). params: output of prepare_params().
    Returns (B, channel, dim, dim) in out_dtype, matching the torch module."""
    w1_p, b1_p, w2_p, b2_p = params
    B, z_size = z.shape
    hid_p = w1_p.shape[1]
    out_p = w2_p.shape[1]
    out_feat = channel * dim * dim
    assert w1_p.shape[0] == z_size and w2_p.shape == (hid_p, out_p)
    assert out_feat <= out_p

    # Double-buffered z-in + out tiles per row (weights are grid-resident).
    bytes_per_row = 2 * (z_size * z.dtype.itemsize + out_p * jnp.dtype(out_dtype).itemsize)
    tb = _choose_batch_tile(B, batch_tile, bytes_per_row)
    num_blocks = pl.cdiv(B, tb)   # ragged last block; no batch-pad copy of z

    flat = pl.pallas_call(
        _generator_kernel,
        out_shape=jax.ShapeDtypeStruct((B, out_p), out_dtype),
        grid_spec=pltpu.PrefetchScalarGridSpec(
            num_scalar_prefetch=0,
            grid=(num_blocks,),
            in_specs=[
                pl.BlockSpec((tb, z_size), lambda i: (i, 0)),      # z tile
                pl.BlockSpec((z_size, hid_p), lambda i: (0, 0)),   # W1 (resident)
                pl.BlockSpec((1, hid_p), lambda i: (0, 0)),        # b1
                pl.BlockSpec((hid_p, out_p), lambda i: (0, 0)),    # W2 (resident)
                pl.BlockSpec((1, out_p), lambda i: (0, 0)),        # b2
            ],
            out_specs=pl.BlockSpec((tb, out_p), lambda i: (i, 0)),
        ),
        compiler_params=pltpu.CompilerParams(
            dimension_semantics=("parallel",),   # batch blocks across v7x's two TCs
        ),
    )(z, w1_p, b1_p, w2_p, b2_p)

    # glue: drop feature padding, then torch's .view(-1, C, D, D) (NCHW)
    return flat[:, :out_feat].reshape(B, channel, dim, dim)


# ----------------------------------------------------------------------------
# Init + reference + self-test
# ----------------------------------------------------------------------------
def init_params(key, z_size, hidden, out_feat):
    """Deterministic init mimicking nn.Linear default (U[-1/sqrt(fan_in), +])."""
    k1, k2, k3, k4 = jax.random.split(key, 4)
    lim1 = 1.0 / jnp.sqrt(jnp.float32(z_size))
    lim2 = 1.0 / jnp.sqrt(jnp.float32(hidden))
    w1 = jax.random.uniform(k1, (z_size, hidden), jnp.float32, -lim1, lim1)
    b1 = jax.random.uniform(k2, (hidden,), jnp.float32, -lim1, lim1)
    w2 = jax.random.uniform(k3, (hidden, out_feat), jnp.float32, -lim2, lim2)
    b2 = jax.random.uniform(k4, (out_feat,), jnp.float32, -lim2, lim2)
    return w1, b1, w2, b2


def _reference(z, w1, b1, w2, b2, channel, dim):
    out = jax.nn.sigmoid(jnp.maximum(z @ w1 + b1, 0.0) @ w2 + b2)
    return out.reshape(z.shape[0], channel, dim, dim)


if __name__ == "__main__":
    # opt: z_size=32, dim=16, channel=1  (fc1 hidden = 400 fixed by the module)
    Z_SIZE, HIDDEN, DIM, CHANNEL = 32, 400, 16, 1
    OUT_FEAT = CHANNEL * DIM * DIM

    key = jax.random.PRNGKey(0)
    kz, kz2, kp = jax.random.split(key, 3)
    w1, b1, w2, b2 = init_params(kp, Z_SIZE, HIDDEN, OUT_FEAT)

    # one-time parameter prep (hoisted out of the per-call path)
    params_f32 = prepare_params(w1, b1, w2, b2, mxu_dtype=jnp.float32)
    params_bf16 = prepare_params(w1, b1, w2, b2, mxu_dtype=jnp.bfloat16)

    # --- small aligned batch, f32 MXU operands ------------------------------
    B = 8
    z = jax.random.normal(kz, (B, Z_SIZE), jnp.float32)
    out = generator_mnist_forward(z, params_f32, channel=CHANNEL, dim=DIM)
    out = jax.block_until_ready(out)
    ref = _reference(z, w1, b1, w2, b2, CHANNEL, DIM)
    assert out.shape == (B, CHANNEL, DIM, DIM)
    assert jnp.allclose(out, ref, atol=5e-3, rtol=5e-3), "f32 path mismatch"

    # --- bf16 MXU operands + bf16 output stream (works on v5e/v6e/v7x) ------
    out_bf = generator_mnist_forward(z, params_bf16, channel=CHANNEL, dim=DIM,
                                     out_dtype=jnp.bfloat16)
    out_bf = jax.block_until_ready(out_bf)
    assert out_bf.dtype == jnp.bfloat16
    assert jnp.allclose(out_bf.astype(jnp.float32), ref, atol=4e-2, rtol=4e-2), \
        "bf16 path mismatch"

    # --- non-multiple batch: 2-block "parallel" grid with a ragged edge -----
    B2 = 500  # tb=256 -> grid=(2,), second block covers rows 256..499 (ragged)
    z2 = jax.random.normal(kz2, (B2, Z_SIZE), jnp.float32)
    out2 = generator_mnist_forward(z2, params_f32, channel=CHANNEL, dim=DIM)
    out2 = jax.block_until_ready(out2)
    ref2 = _reference(z2, w1, b1, w2, b2, CHANNEL, DIM)
    assert out2.shape == (B2, CHANNEL, DIM, DIM)
    assert jnp.allclose(out2, ref2, atol=5e-3, rtol=5e-3), "tiled/ragged path mismatch"

    print("KERNEL_OK")
</pallas_src>

<mosaic_0001>
module attributes {stable_mosaic.version = 11 : i64} {
  func.func @_generator_kernel(%arg0: i32, %arg1: memref<8x32xf32, #tpu.memory_space<vmem>>, %arg2: memref<32x512xf32, #tpu.memory_space<vmem>>, %arg3: memref<1x512xf32, #tpu.memory_space<vmem>>, %arg4: memref<512x256xf32, #tpu.memory_space<vmem>>, %arg5: memref<1x256xf32, #tpu.memory_space<vmem>>, %arg6: memref<8x256xf32, #tpu.memory_space<vmem>>) attributes {dimension_semantics = [#tpu.dimension_semantics<parallel>], iteration_bounds = array<i64: 1>, scalar_prefetch = 0 : i64, scratch_operands = 0 : i64, tpu.core_type = #tpu.core_type<tc>, window_params = [{transform_indices = @transform_0, window_bounds = array<i64: 8, 32>}, {pipeline_mode = #tpu.pipeline_mode<synchronous>, transform_indices = @transform_1, window_bounds = array<i64: 32, 512>}, {pipeline_mode = #tpu.pipeline_mode<synchronous>, transform_indices = @transform_2, window_bounds = array<i64: 1, 512>}, {pipeline_mode = #tpu.pipeline_mode<synchronous>, transform_indices = @transform_3, window_bounds = array<i64: 512, 256>}, {pipeline_mode = #tpu.pipeline_mode<synchronous>, transform_indices = @transform_4, window_bounds = array<i64: 1, 256>}, {transform_indices = @transform_5, window_bounds = array<i64: 8, 256>}]} {
    %c0 = arith.constant 0 : index
    %c0_0 = arith.constant 0 : index
    %0 = vector.load %arg2[%c0, %c0_0] : memref<32x512xf32, #tpu.memory_space<vmem>>, vector<32x512xf32>
    %c0_1 = arith.constant 0 : index
    %c0_2 = arith.constant 0 : index
    %1 = vector.load %arg1[%c0_1, %c0_2] : memref<8x32xf32, #tpu.memory_space<vmem>>, vector<8x32xf32>
    %cst = arith.constant dense<0.000000e+00> : vector<8x512xf32>
    %2 = tpu.matmul %1, %0, %cst {dimension_numbers = #tpu.dot_dimension_numbers<[1], [0], [0], [1], [0, 0, 1, 1], [], []>} : vector<8x32xf32>, vector<32x512xf32>, vector<8x512xf32> -> vector<8x512xf32>
    %c0_3 = arith.constant 0 : index
    %c0_4 = arith.constant 0 : index
    %3 = vector.load %arg3[%c0_3, %c0_4] : memref<1x512xf32, #tpu.memory_space<vmem>>, vector<1x512xf32>
    %4 = vector.broadcast %3 : vector<1x512xf32> to vector<8x512xf32>
    %5 = arith.addf %2, %4 : vector<8x512xf32>
    %cst_5 = arith.constant 0.000000e+00 : f32
    %6 = vector.broadcast %cst_5 : f32 to vector<8x512xf32>
    %7 = arith.maximumf %5, %6 : vector<8x512xf32>
    %c0_6 = arith.constant 0 : index
    %c0_7 = arith.constant 0 : index
    %8 = vector.load %arg4[%c0_6, %c0_7] : memref<512x256xf32, #tpu.memory_space<vmem>>, vector<512x256xf32>
    %cst_8 = arith.constant dense<0.000000e+00> : vector<8x256xf32>
    %9 = tpu.matmul %7, %8, %cst_8 {dimension_numbers = #tpu.dot_dimension_numbers<[1], [0], [0], [1], [0, 0, 1, 1], [], []>} : vector<8x512xf32>, vector<512x256xf32>, vector<8x256xf32> -> vector<8x256xf32>
    %c0_9 = arith.constant 0 : index
    %c0_10 = arith.constant 0 : index
    %10 = vector.load %arg5[%c0_9, %c0_10] : memref<1x256xf32, #tpu.memory_space<vmem>>, vector<1x256xf32>
    %11 = vector.broadcast %10 : vector<1x256xf32> to vector<8x256xf32>
    %12 = arith.addf %9, %11 : vector<8x256xf32>
    %cst_11 = arith.constant 5.000000e-01 : f32
    %13 = vector.broadcast %cst_11 : f32 to vector<8x256xf32>
    %14 = arith.mulf %13, %12 : vector<8x256xf32>
    %15 = math.tanh %14 : vector<8x256xf32>
    %cst_12 = arith.constant 5.000000e-01 : f32
    %16 = vector.broadcast %cst_12 : f32 to vector<8x256xf32>
    %17 = arith.mulf %16, %15 : vector<8x256xf32>
    %cst_13 = arith.constant 5.000000e-01 : f32
    %18 = vector.broadcast %cst_13 : f32 to vector<8x256xf32>
    %19 = arith.addf %17, %18 : vector<8x256xf32>
    %c0_14 = arith.constant 0 : index
    %c0_15 = arith.constant 0 : index
    %20 = vector.load %arg6[%c0_14, %c0_15] : memref<8x256xf32, #tpu.memory_space<vmem>>, vector<8x256xf32>
    tpu.vector_store %arg6[%c0_14, %c0_15], %19 {strides = array<i32>} : memref<8x256xf32, #tpu.memory_space<vmem>>, vector<8x256xf32>,
    return
  }
  func.func @transform_0(%arg0: i32) -> (i32, i32) {
    %c0_i32 = arith.constant 0 : i32
    %c0_i32_0 = arith.constant 0 : i32
    return %arg0, %c0_i32 : i32, i32
  }
  func.func @transform_1(%arg0: i32) -> (i32, i32) {
    %c0_i32 = arith.constant 0 : i32
    %c0_i32_0 = arith.constant 0 : i32
    %c0_i32_1 = arith.constant 0 : i32
    return %c0_i32, %c0_i32_0 : i32, i32
  }
  func.func @transform_2(%arg0: i32) -> (i32, i32) {
    %c0_i32 = arith.constant 0 : i32
    %c0_i32_0 = arith.constant 0 : i32
    %c0_i32_1 = arith.constant 0 : i32
    return %c0_i32, %c0_i32_0 : i32, i32
  }
  func.func @transform_3(%arg0: i32) -> (i32, i32) {
    %c0_i32 = arith.constant 0 : i32
    %c0_i32_0 = arith.constant 0 : i32
    %c0_i32_1 = arith.constant 0 : i32
    return %c0_i32, %c0_i32_0 : i32, i32
  }
  func.func @transform_4(%arg0: i32) -> (i32, i32) {
    %c0_i32 = arith.constant 0 : i32
    %c0_i32_0 = arith.constant 0 : i32
    %c0_i32_1 = arith.constant 0 : i32
    return %c0_i32, %c0_i32_0 : i32, i32
  }
  func.func @transform_5(%arg0: i32) -> (i32, i32) {
    %c0_i32 = arith.constant 0 : i32
    %c0_i32_0 = arith.constant 0 : i32
    return %arg0, %c0_i32 : i32, i32
  }
}

</mosaic_0001>

<bundles_post_ra>
// kernel: tpu_custom_call.1
= control target key start
LH: loop header
LB: loop body
LE: loop exit
PB: predicated region body
PF: predicated region fallthrough
CT: control target
= control target key end

     0   :  { %10 = vsyncpa [#allocation3], 0  ;;  %s752_s0 = inlined_call_operand.hbm [shape: f32[8,32], index: 0, kind: input, shape index: {}]   ;;  %s753_s1 = inlined_call_operand.hbm [shape: f32[32,512], index: 1, kind: input, shape index: {}]   ;;  %s754_s2 = inlined_call_operand.hbm [shape: f32[1,512], index: 2, kind: input, shape index: {}]   ;;  %s755_s3 = inlined_call_operand.hbm [shape: f32[512,256], index: 3, kind: input, shape index: {}]   ;;  %s756_s4 = inlined_call_operand.vmem [shape: f32[1,256], index: 4, kind: input, shape index: {}]   ;;  %s757_s5 = inlined_call_operand.hbm [shape: f32[8,256], index: 5, kind: output, shape index: {}]  }
   0x1   :  { %11 = vsyncpa [#allocation6], 0 }
   0x2   :  { %12 = vsyncpa [#allocation9], 0 }
   0x3   :  { %13 = vsyncpa [#allocation4], 0  ;;  %s694_s18 = smov [#allocation5]  }
   0x4   :  { %s29_s19 = sshll.u32 %s694_s18, 4  ;;  %s30_s19 = int_to_ptr.vmem [resolvable:$true] %s29_s19 }
   0x5   :  { %s594_s20 = scalar_lea.vmem %s30_s19, 2048  ;;  %p599_p1 = scmp.lt.s32.totalorder %s30_s19, %s30_s19 }
   0x6   :  { %p595_p0 = scmp.ne.s32.totalorder %s30_s19, %s594_s20  ;;  %p600_p2 = scmp.lt.s32.totalorder %s594_s20, %s594_s20 }
   0x8   :  { %p601_p3 = por %p600_p2, %p599_p1 }
   0xa   :  { %p602_p4 = pnand %p601_p3, %p595_p0 }
   0xc   :  { %605 = shalt.err (!%p602_p4)
}
   0xd   :  { %s695_s21 = smov 512   ;;  %s696_s22 = smov 32  }
   0xe   :  { %35 = dma.hbm_to_vmem [thread:$0]  %s753_s1, 2048, %s30_s19, [#allocation6], %s695_s21, %s695_s21, %s696_s22  }
   0xf   :  { %s697_s25 = smov [#allocation2]   ;;  %s698_s27 = smov [#allocation7]  }
  0x10   :  { %s20_s26 = sshll.u32 %s697_s25, 4  ;;  %s42_s28 = sshll.u32 %s698_s27, 4  ;;  %s21_s26 = int_to_ptr.vmem [resolvable:$true] %s20_s26  ;;  %s43_s28 = int_to_ptr.vmem [resolvable:$true] %s42_s28 }
  0x11   :  { %s614_s29 = scalar_lea.vmem %s21_s26, 128  ;;  %p619_p6 = scmp.lt.s32.totalorder %s21_s26, %s21_s26 }
  0x12   :  { %p615_p5 = scmp.ne.s32.totalorder %s21_s26, %s614_s29  ;;  %p620_p7 = scmp.lt.s32.totalorder %s614_s29, %s614_s29 }
  0x14   :  { %p621_p8 = por %p620_p7, %p619_p6 }
  0x16   :  { %p622_p9 = pnand %p621_p8, %p615_p5 }
  0x18   :  { %625 = shalt.err (!%p622_p9)
}
  0x19   :  { %23 = dma.hbm_to_vmem [thread:$0]  %s752_s0, 128, %s21_s26, [#allocation3]  }
  0x1a   :  { %s634_s7 = scalar_lea.vmem %s43_s28, 64  ;;  %p639_p11 = scmp.lt.s32.totalorder %s43_s28, %s43_s28 }
  0x1b   :  { %p635_p10 = scmp.ne.s32.totalorder %s43_s28, %s634_s7  ;;  %p640_p12 = scmp.lt.s32.totalorder %s634_s7, %s634_s7 }
  0x1d   :  { %p641_p13 = por %p640_p12, %p639_p11 }
  0x1f   :  { %p642_p0 = pnand %p641_p13, %p635_p10 }
  0x21   :  { %645 = shalt.err (!%p642_p0)
}
  0x22   :  { %45 = dma.hbm_to_vmem [thread:$0]  %s754_s2, 64, %s43_s28, [#allocation6]  }
  0x23   :  { %s699_s9 = smov [#allocation8]  }
  0x24   :  { %s51_s10 = sshll.u32 %s699_s9, 4  ;;  %s52_s10 = int_to_ptr.vmem [resolvable:$true] %s51_s10 }
  0x25   :  { %s654_s11 = scalar_lea.vmem %s52_s10, 16384  ;;  %p659_p2 = scmp.lt.s32.totalorder %s52_s10, %s52_s10 }
  0x26   :  { %p655_p1 = scmp.ne.s32.totalorder %s52_s10, %s654_s11  ;;  %p660_p3 = scmp.lt.s32.totalorder %s654_s11, %s654_s11 }
  0x28   :  { %p661_p4 = por %p660_p3, %p659_p2 }
  0x2a   :  { %p662_p5 = pnand %p661_p4, %p655_p1 }
  0x2c   :  { %665 = shalt.err (!%p662_p5)
}
  0x2d   :  { %s700_s0 = smov 256   ;;  %s701_s12 = smov 16  }
  0x2e   :  { %57 = dma.hbm_to_vmem [thread:$0]  %s755_s3, 16384, %s52_s10, [#allocation9], %s700_s0, %s700_s0, %s701_s12  }
  0x2f   :  { %686 = dma.done.wait [#allocation3], 128  }
  0x30   :  { %687 = vsyncadd [#allocation3], 4294967168 }
  0x31   :  { %688 = dma.done.wait [#allocation6], 2112  }
  0x32   :  { %689 = vsyncadd [#allocation6], 4294965184 }
  0x33   :  { %690 = dma.done.wait [#allocation9], 16384  }
  0x34   :  { %691 = vsyncadd [#allocation9], 4294950912  ;;  %v702_v0 = vmov 0.0   ;;  %v85_v1 = vld [vmem:[#allocation5 + $0x68] sm:$0xff]  ;;  %v87_v2 = vld [vmem:[#allocation5 + $0x78] sm:$0xff]  ;;  %vm111_vm0 = vcmask 261120  }
  0x35   :  { %179 = vmatprep.mubr.f32.mxu0 %v702_v0  ;;  %250 = vmatprep.mubr.f32.mxu1 %v702_v0  ;;  %v84_v3 = vld [vmem:[#allocation5 + $0x60] sm:$0xff]  ;;  %v86_v4 = vld [vmem:[#allocation5 + $0x70] sm:$0xff]  ;;  %v81_v5 = vld [vmem:[#allocation5 + $0x48] sm:$0xff]  ;;  %s703_s15 = smov [#allocation10]  }
  0x36   :  { %139 = vmatprep.subr.mxu0 %v85_v1  ;;  %210 = vmatprep.subr.mxu1 %v87_v2  ;;  %v83_v6 = vld [vmem:[#allocation5 + $0x58] sm:$0xff]  ;;  %v80_v7 = vld [vmem:[#allocation5 + $0x40] sm:$0xff]  ;;  %v82_v8 = vld [vmem:[#allocation5 + $0x50] sm:$0xff]  ;;  %s559_s16 = sshll.u32 %s703_s15, 4  ;;  %s560_s16 = int_to_ptr.vmem [resolvable:$true] %s559_s16 }
  0x37   :  { %140 = vmatpush1.msra.mxu0 %v84_v3  ;;  %211 = vmatpush1.msra.mxu1 %v86_v4  ;;  %v77_v9 = vld [vmem:[#allocation5 + $0x28] sm:$0xff]  ;;  %v79_v10 = vld [vmem:[#allocation5 + $0x38] sm:$0xff]  ;;  %v76_v11 = vld [vmem:[#allocation5 + $0x20] sm:$0xff]  ;;  %p671_p7 = scmp.lt.s32.totalorder %s560_s16, %s560_s16 }
  0x38   :  { %141 = vmatprep.subr.mxu0 %v81_v5  ;;  %212 = vmatprep.subr.mxu1 %v83_v6  ;;  %v78_v12 = vld [vmem:[#allocation5 + $0x30] sm:$0xff]  ;;  %v73_v13 = vld [vmem:[#allocation5 + $0x8] sm:$0xff]  ;;  %v75_v14 = vld [vmem:[#allocation5 + $0x18] sm:$0xff] }
  0x39   :  { %142 = vmatpush1.msra.mxu0 %v80_v7  ;;  %213 = vmatpush1.msra.mxu1 %v82_v8  ;;  %v72_v15 = vld [vmem:[#allocation5] sm:$0xff]  ;;  %v74_v16 = vld [vmem:[#allocation5 + $0x10] sm:$0xff]  ;;  %v88_v17 = vld [vmem:[#allocation2] sm:$0xff] }
  0x3a   :  { %143 = vmatprep.subr.mxu0 %v77_v9  ;;  %214 = vmatprep.subr.mxu1 %v79_v10  ;;  %v292_v18 = vld [vmem:[#allocation8 + $0xf8] sm:$0xff]  ;;  %v291_v20 = vld [vmem:[#allocation8 + $0xf0] sm:$0xff]  ;;  %v290_v22 = vld [vmem:[#allocation8 + $0xe8] sm:$0xff] }
  0x3b   :  { %144 = vmatpush1.msra.mxu0 %v76_v11  ;;  %215 = vmatpush1.msra.mxu1 %v78_v12  ;;  %v356_v19 = vld [vmem:[#allocation8 + $0x2f8] sm:$0xff]  ;;  %v355_v21 = vld [vmem:[#allocation8 + $0x2f0] sm:$0xff]  ;;  %v354_v23 = vld [vmem:[#allocation8 + $0x2e8] sm:$0xff] }
  0x3c   :  { %145 = vmatprep.subr.mxu0 %v73_v13  ;;  %216 = vmatprep.subr.mxu1 %v75_v14  ;;  %v289_v24 = vld [vmem:[#allocation8 + $0xe0] sm:$0xff]  ;;  %v288_v26 = vld [vmem:[#allocation8 + $0xd8] sm:$0xff]  ;;  %v287_v28 = vld [vmem:[#allocation8 + $0xd0] sm:$0xff] }
  0x3d   :  { %146 = vmatpush1.msra.mxu0 %v72_v15  ;;  %217 = vmatpush1.msra.mxu1 %v74_v16  ;;  %v353_v25 = vld [vmem:[#allocation8 + $0x2e0] sm:$0xff]  ;;  %v352_v27 = vld [vmem:[#allocation8 + $0x2d8] sm:$0xff]  ;;  %v351_v29 = vld [vmem:[#allocation8 + $0x2d0] sm:$0xff] }
  0x3e   :  { %570 = vmatmul.mubr.msk.f32.vlgmr.msra.gmra.mxu0 %vm111_vm0, %v88_v17  ;;  %571 = vmatmul.mubr.msk.f32.vlgmr.msra.gmra.mxu1 %vm111_vm0, %v88_v17  ;;  %v286_v30 = vld [vmem:[#allocation8 + $0xc8] sm:$0xff]  ;;  %v285_v32 = vld [vmem:[#allocation8 + $0xc0] sm:$0xff]  ;;  %v284_v34 = vld [vmem:[#allocation8 + $0xb8] sm:$0xff] }
  0x3f   :  { %401 = vmatprep.subr.mxu0 %v292_v18  ;;  %472 = vmatprep.subr.mxu1 %v356_v19  ;;  %v350_v31 = vld [vmem:[#allocation8 + $0x2c8] sm:$0xff]  ;;  %v349_v33 = vld [vmem:[#allocation8 + $0x2c0] sm:$0xff]  ;;  %v348_v35 = vld [vmem:[#allocation8 + $0x2b8] sm:$0xff] }
  0x40   :  { %402 = vmatpush1.msra.mxu0 %v291_v20  ;;  %473 = vmatpush1.msra.mxu1 %v355_v21  ;;  %v283_v36 = vld [vmem:[#allocation8 + $0xb0] sm:$0xff]  ;;  %v282_v38 = vld [vmem:[#allocation8 + $0xa8] sm:$0xff]  ;;  %v281_v40 = vld [vmem:[#allocation8 + $0xa0] sm:$0xff] }
  0x41   :  { %403 = vmatprep.subr.mxu0 %v290_v22  ;;  %474 = vmatprep.subr.mxu1 %v354_v23  ;;  %v347_v37 = vld [vmem:[#allocation8 + $0x2b0] sm:$0xff]  ;;  %v346_v39 = vld [vmem:[#allocation8 + $0x2a8] sm:$0xff]  ;;  %v345_v41 = vld [vmem:[#allocation8 + $0x2a0] sm:$0xff] }
  0x42   :  { %404 = vmatpush1.msra.mxu0 %v289_v24  ;;  %475 = vmatpush1.msra.mxu1 %v353_v25  ;;  %v280_v42 = vld [vmem:[#allocation8 + $0x98] sm:$0xff]  ;;  %v279_v44 = vld [vmem:[#allocation8 + $0x90] sm:$0xff]  ;;  %v278_v46 = vld [vmem:[#allocation8 + $0x88] sm:$0xff] }
  0x43   :  { %405 = vmatprep.subr.mxu0 %v288_v26  ;;  %476 = vmatprep.subr.mxu1 %v352_v27  ;;  %v344_v43 = vld [vmem:[#allocation8 + $0x298] sm:$0xff]  ;;  %v343_v45 = vld [vmem:[#allocation8 + $0x290] sm:$0xff]  ;;  %v342_v47 = vld [vmem:[#allocation8 + $0x288] sm:$0xff] }
  0x44   :  { %406 = vmatpush1.msra.mxu0 %v287_v28  ;;  %477 = vmatpush1.msra.mxu1 %v351_v29  ;;  %v277_v48 = vld [vmem:[#allocation8 + $0x80] sm:$0xff]  ;;  %v276_v50 = vld [vmem:[#allocation8 + $0x78] sm:$0xff]  ;;  %v275_v52 = vld [vmem:[#allocation8 + $0x70] sm:$0xff] }
  0x45   :  { %407 = vmatprep.subr.mxu0 %v286_v30  ;;  %478 = vmatprep.subr.mxu1 %v350_v31  ;;  %v341_v49 = vld [vmem:[#allocation8 + $0x280] sm:$0xff]  ;;  %v340_v51 = vld [vmem:[#allocation8 + $0x278] sm:$0xff]  ;;  %v339_v53 = vld [vmem:[#allocation8 + $0x270] sm:$0xff] }
  0x46   :  { %408 = vmatpush1.msra.mxu0 %v285_v32  ;;  %479 = vmatpush1.msra.mxu1 %v349_v33  ;;  %v274_v54 = vld [vmem:[#allocation8 + $0x68] sm:$0xff]  ;;  %v273_v56 = vld [vmem:[#allocation8 + $0x60] sm:$0xff]  ;;  %v272_v58 = vld [vmem:[#allocation8 + $0x58] sm:$0xff] }
  0x47   :  { %409 = vmatprep.subr.mxu0 %v284_v34  ;;  %480 = vmatprep.subr.mxu1 %v348_v35  ;;  %v338_v55 = vld [vmem:[#allocation8 + $0x268] sm:$0xff]  ;;  %v337_v57 = vld [vmem:[#allocation8 + $0x260] sm:$0xff]  ;;  %v336_v59 = vld [vmem:[#allocation8 + $0x258] sm:$0xff] }
  0x48   :  { %410 = vmatpush1.msra.mxu0 %v283_v36  ;;  %481 = vmatpush1.msra.mxu1 %v347_v37  ;;  %v271_v60 = vld [vmem:[#allocation8 + $0x50] sm:$0xff]  ;;  %v270_v62 = vld [vmem:[#allocation8 + $0x48] sm:$0xff]  ;;  %v269_v0 = vld [vmem:[#allocation8 + $0x40] sm:$0xff] }
  0x49   :  { %411 = vmatprep.subr.mxu0 %v282_v38  ;;  %482 = vmatprep.subr.mxu1 %v346_v39  ;;  %v335_v61 = vld [vmem:[#allocation8 + $0x250] sm:$0xff]  ;;  %v334_v63 = vld [vmem:[#allocation8 + $0x248] sm:$0xff]  ;;  %v333_v1 = vld [vmem:[#allocation8 + $0x240] sm:$0xff] }
  0x4a   :  { %412 = vmatpush1.msra.mxu0 %v281_v40  ;;  %483 = vmatpush1.msra.mxu1 %v345_v41  ;;  %v268_v2 = vld [vmem:[#allocation8 + $0x38] sm:$0xff]  ;;  %v267_v4 = vld [vmem:[#allocation8 + $0x30] sm:$0xff]  ;;  %v266_v6 = vld [vmem:[#allocation8 + $0x28] sm:$0xff] }
  0x4b   :  { %413 = vmatprep.subr.mxu0 %v280_v42  ;;  %484 = vmatprep.subr.mxu1 %v344_v43  ;;  %v332_v3 = vld [vmem:[#allocation8 + $0x238] sm:$0xff]  ;;  %v331_v5 = vld [vmem:[#allocation8 + $0x230] sm:$0xff]  ;;  %v330_v7 = vld [vmem:[#allocation8 + $0x228] sm:$0xff] }
  0x4c   :  { %414 = vmatpush1.msra.mxu0 %v279_v44  ;;  %485 = vmatpush1.msra.mxu1 %v343_v45  ;;  %v265_v8 = vld [vmem:[#allocation8 + $0x20] sm:$0xff]  ;;  %v264_v10 = vld [vmem:[#allocation8 + $0x18] sm:$0xff]  ;;  %v263_v12 = vld [vmem:[#allocation8 + $0x10] sm:$0xff] }
  0x4d   :  { %415 = vmatprep.subr.mxu0 %v278_v46  ;;  %486 = vmatprep.subr.mxu1 %v342_v47  ;;  %v329_v9 = vld [vmem:[#allocation8 + $0x220] sm:$0xff]  ;;  %v328_v11 = vld [vmem:[#allocation8 + $0x218] sm:$0xff]  ;;  %v327_v13 = vld [vmem:[#allocation8 + $0x210] sm:$0xff] }
  0x4e   :  { %416 = vmatpush1.msra.mxu0 %v277_v48  ;;  %487 = vmatpush1.msra.mxu1 %v341_v49  ;;  %v262_v14 = vld [vmem:[#allocation8 + $0x8] sm:$0xff]  ;;  %v261_v16 = vld [vmem:[#allocation8] sm:$0xff]  ;;  %v324_v18 = vld [vmem:[#allocation8 + $0x1f8] sm:$0xff] }
  0x4f   :  { %417 = vmatprep.subr.mxu0 %v276_v50  ;;  %488 = vmatprep.subr.mxu1 %v340_v51  ;;  %v326_v15 = vld [vmem:[#allocation8 + $0x208] sm:$0xff]  ;;  %v325_v17 = vld [vmem:[#allocation8 + $0x200] sm:$0xff]  ;;  %v388_v19 = vld [vmem:[#allocation8 + $0x3f8] sm:$0xff] }
  0x50   :  { %418 = vmatpush1.msra.mxu0 %v275_v52  ;;  %489 = vmatpush1.msra.mxu1 %v339_v53  ;;  %v323_v20 = vld [vmem:[#allocation8 + $0x1f0] sm:$0xff]  ;;  %v322_v22 = vld [vmem:[#allocation8 + $0x1e8] sm:$0xff]  ;;  %v321_v24 = vld [vmem:[#allocation8 + $0x1e0] sm:$0xff] }
  0x51   :  { %419 = vmatprep.subr.mxu0 %v274_v54  ;;  %490 = vmatprep.subr.mxu1 %v338_v55  ;;  %v387_v21 = vld [vmem:[#allocation8 + $0x3f0] sm:$0xff]  ;;  %v386_v23 = vld [vmem:[#allocation8 + $0x3e8] sm:$0xff]  ;;  %v385_v25 = vld [vmem:[#allocation8 + $0x3e0] sm:$0xff] }
  0x52   :  { %420 = vmatpush1.msra.mxu0 %v273_v56  ;;  %491 = vmatpush1.msra.mxu1 %v337_v57  ;;  %v320_v26 = vld [vmem:[#allocation8 + $0x1d8] sm:$0xff]  ;;  %v319_v28 = vld [vmem:[#allocation8 + $0x1d0] sm:$0xff]  ;;  %v318_v30 = vld [vmem:[#allocation8 + $0x1c8] sm:$0xff] }
  0x53   :  { %421 = vmatprep.subr.mxu0 %v272_v58  ;;  %492 = vmatprep.subr.mxu1 %v336_v59  ;;  %v384_v27 = vld [vmem:[#allocation8 + $0x3d8] sm:$0xff]  ;;  %v383_v29 = vld [vmem:[#allocation8 + $0x3d0] sm:$0xff]  ;;  %v382_v31 = vld [vmem:[#allocation8 + $0x3c8] sm:$0xff] }
  0x54   :  { %422 = vmatpush1.msra.mxu0 %v271_v60  ;;  %493 = vmatpush1.msra.mxu1 %v335_v61  ;;  %v317_v32 = vld [vmem:[#allocation8 + $0x1c0] sm:$0xff]  ;;  %v316_v34 = vld [vmem:[#allocation8 + $0x1b8] sm:$0xff]  ;;  %v315_v36 = vld [vmem:[#allocation8 + $0x1b0] sm:$0xff] }
  0x55   :  { %423 = vmatprep.subr.mxu0 %v270_v62  ;;  %494 = vmatprep.subr.mxu1 %v334_v63  ;;  %v381_v33 = vld [vmem:[#allocation8 + $0x3c0] sm:$0xff]  ;;  %v380_v35 = vld [vmem:[#allocation8 + $0x3b8] sm:$0xff]  ;;  %v379_v37 = vld [vmem:[#allocation8 + $0x3b0] sm:$0xff] }
  0x56   :  { %424 = vmatpush1.msra.mxu0 %v269_v0  ;;  %495 = vmatpush1.msra.mxu1 %v333_v1  ;;  %v314_v38 = vld [vmem:[#allocation8 + $0x1a8] sm:$0xff]  ;;  %v313_v40 = vld [vmem:[#allocation8 + $0x1a0] sm:$0xff]  ;;  %v312_v42 = vld [vmem:[#allocation8 + $0x198] sm:$0xff] }
  0x57   :  { %425 = vmatprep.subr.mxu0 %v268_v2  ;;  %496 = vmatprep.subr.mxu1 %v332_v3  ;;  %v378_v39 = vld [vmem:[#allocation8 + $0x3a8] sm:$0xff]  ;;  %v377_v41 = vld [vmem:[#allocation8 + $0x3a0] sm:$0xff]  ;;  %v376_v43 = vld [vmem:[#allocation8 + $0x398] sm:$0xff] }
  0x58   :  { %426 = vmatpush1.msra.mxu0 %v267_v4  ;;  %497 = vmatpush1.msra.mxu1 %v331_v5  ;;  %v311_v44 = vld [vmem:[#allocation8 + $0x190] sm:$0xff]  ;;  %v310_v46 = vld [vmem:[#allocation8 + $0x188] sm:$0xff]  ;;  %v309_v48 = vld [vmem:[#allocation8 + $0x180] sm:$0xff] }
  0x59   :  { %427 = vmatprep.subr.mxu0 %v266_v6  ;;  %498 = vmatprep.subr.mxu1 %v330_v7  ;;  %v375_v45 = vld [vmem:[#allocation8 + $0x390] sm:$0xff]  ;;  %v374_v47 = vld [vmem:[#allocation8 + $0x388] sm:$0xff]  ;;  %v373_v49 = vld [vmem:[#allocation8 + $0x380] sm:$0xff] }
  0x5a   :  { %428 = vmatpush1.msra.mxu0 %v265_v8  ;;  %499 = vmatpush1.msra.mxu1 %v329_v9  ;;  %v308_v50 = vld [vmem:[#allocation8 + $0x178] sm:$0xff]  ;;  %v307_v52 = vld [vmem:[#allocation8 + $0x170] sm:$0xff]  ;;  %v306_v54 = vld [vmem:[#allocation8 + $0x168] sm:$0xff] }
  0x5b   :  { %429 = vmatprep.subr.mxu0 %v264_v10  ;;  %500 = vmatprep.subr.mxu1 %v328_v11  ;;  %v372_v51 = vld [vmem:[#allocation8 + $0x378] sm:$0xff]  ;;  %v371_v53 = vld [vmem:[#allocation8 + $0x370] sm:$0xff]  ;;  %v370_v55 = vld [vmem:[#allocation8 + $0x368] sm:$0xff] }
  0x5c   :  { %430 = vmatpush1.msra.mxu0 %v263_v12  ;;  %501 = vmatpush1.msra.mxu1 %v327_v13  ;;  %v305_v56 = vld [vmem:[#allocation8 + $0x160] sm:$0xff]  ;;  %v304_v58 = vld [vmem:[#allocation8 + $0x158] sm:$0xff]  ;;  %v303_v60 = vld [vmem:[#allocation8 + $0x150] sm:$0xff] }
  0x5d   :  { %431 = vmatprep.subr.mxu0 %v262_v14  ;;  %502 = vmatprep.subr.mxu1 %v326_v15  ;;  %v369_v57 = vld [vmem:[#allocation8 + $0x360] sm:$0xff]  ;;  %v368_v59 = vld [vmem:[#allocation8 + $0x358] sm:$0xff]  ;;  %v367_v61 = vld [vmem:[#allocation8 + $0x350] sm:$0xff] }
  0x5e   :  { %432 = vmatpush1.msra.mxu0 %v261_v16  ;;  %503 = vmatpush1.msra.mxu1 %v325_v17  ;;  %v302_v62 = vld [vmem:[#allocation8 + $0x148] sm:$0xff]  ;;  %v301_v0 = vld [vmem:[#allocation8 + $0x140] sm:$0xff]  ;;  %v300_v2 = vld [vmem:[#allocation8 + $0x138] sm:$0xff] }
  0x5f   :  { %433 = vmatprep.subr.mxu0 %v324_v18  ;;  %504 = vmatprep.subr.mxu1 %v388_v19  ;;  %v366_v63 = vld [vmem:[#allocation8 + $0x348] sm:$0xff]  ;;  %v365_v1 = vld [vmem:[#allocation8 + $0x340] sm:$0xff]  ;;  %v364_v3 = vld [vmem:[#allocation8 + $0x338] sm:$0xff]  ;;  %v91_v18 = vlaneseq }
  0x60   :  { %434 = vmatpush2.msra.mxu0 %v323_v20  ;;  %505 = vmatpush2.msra.mxu1 %v387_v21  ;;  %v299_v4 = vld [vmem:[#allocation8 + $0x130] sm:$0xff]  ;;  %v298_v6 = vld [vmem:[#allocation8 + $0x128] sm:$0xff]  ;;  %v297_v8 = vld [vmem:[#allocation8 + $0x120] sm:$0xff] }
  0x61   :  { %435 = vmatprep.subr.mxu0 %v322_v22  ;;  %506 = vmatprep.subr.mxu1 %v386_v23  ;;  %v363_v5 = vld [vmem:[#allocation8 + $0x330] sm:$0xff]  ;;  %v362_v7 = vld [vmem:[#allocation8 + $0x328] sm:$0xff]  ;;  %v361_v9 = vld [vmem:[#allocation8 + $0x320] sm:$0xff]  ;;  %v92_v19 = vshrl.u32 %v91_v18, 7 }
  0x62   :  { %436 = vmatpush2.msra.mxu0 %v321_v24  ;;  %507 = vmatpush2.msra.mxu1 %v385_v25  ;;  %v296_v10 = vld [vmem:[#allocation8 + $0x118] sm:$0xff]  ;;  %v295_v12 = vld [vmem:[#allocation8 + $0x110] sm:$0xff]  ;;  %v294_v14 = vld [vmem:[#allocation8 + $0x108] sm:$0xff] }
  0x63   :  { %437 = vmatprep.subr.mxu0 %v320_v26  ;;  %508 = vmatprep.subr.mxu1 %v384_v27  ;;  %v360_v11 = vld [vmem:[#allocation8 + $0x318] sm:$0xff]  ;;  %v359_v13 = vld [vmem:[#allocation8 + $0x310] sm:$0xff]  ;;  %v358_v15 = vld [vmem:[#allocation8 + $0x308] sm:$0xff]  ;;  %v101_v20 = vsub.s32 2, %v92_v19  ;;  %v93_v21 = vsub.s32 0, %v92_v19  ;;  %v97_v23 = vsub.s32 1, %v92_v19 }
  0x64   :  { %438 = vmatpush2.msra.mxu0 %v319_v28  ;;  %509 = vmatpush2.msra.mxu1 %v383_v29  ;;  %v293_v16 = vld [vmem:[#allocation8 + $0x100] sm:$0xff]  ;;  %v89_v22 = vld [vmem:[#allocation7] sm:$0xf]  ;;  %v105_v24 = vsub.s32 3, %v92_v19 }
  0x65   :  { %439 = vmatprep.subr.mxu0 %v318_v30  ;;  %510 = vmatprep.subr.mxu1 %v382_v31  ;;  %v357_v17 = vld [vmem:[#allocation8 + $0x300] sm:$0xff]  ;;  %v102_v25 = vrot.slane %v89_v22, %v101_v20  ;;  %v94_v26 = vrot.slane %v89_v22, %v93_v21  ;;  %v98_v27 = vrot.slane %v89_v22, %v97_v23 }
  0x66   :  { %440 = vmatpush2.msra.mxu0 %v317_v32  ;;  %511 = vmatpush2.msra.mxu1 %v381_v33  ;;  %v106_v28 = vrot.slane %v89_v22, %v105_v24 }
  0x67   :  { %441 = vmatprep.subr.mxu0 %v316_v34  ;;  %512 = vmatprep.subr.mxu1 %v380_v35 }
  0x68   :  { %442 = vmatpush2.msra.mxu0 %v315_v36  ;;  %513 = vmatpush2.msra.mxu1 %v379_v37 }
  0x69   :  { %443 = vmatprep.subr.mxu0 %v314_v38  ;;  %514 = vmatprep.subr.mxu1 %v378_v39 }
  0x6a   :  { %444 = vmatpush2.msra.mxu0 %v313_v40  ;;  %515 = vmatpush2.msra.mxu1 %v377_v41  ;;  %v389_v41 = vld [vmem:[%s756_s4] sm:$0x3]  ;;  %s666_s4 = scalar_lea.vmem %s560_s16, 256 }
  0x6b   :  { %445 = vmatprep.subr.mxu0 %v312_v42  ;;  %516 = vmatprep.subr.mxu1 %v376_v43  ;;  %v394_v42 = vrot.slane %v389_v41, %v93_v21  ;;  %v398_v43 = vrot.slane %v389_v41, %v97_v23  ;;  %p667_p6 = scmp.ne.s32.totalorder %s560_s16, %s666_s4  ;;  %p672_p8 = scmp.lt.s32.totalorder %s666_s4, %s666_s4 }
  0x6c   :  { %446 = vmatpush2.msra.mxu0 %v311_v44  ;;  %517 = vmatpush2.msra.mxu1 %v375_v45 }
  0x6d   :  { %447 = vmatprep.subr.mxu0 %v310_v46  ;;  %518 = vmatprep.subr.mxu1 %v374_v47  ;;  %p673_p9 = por %p672_p8, %p671_p7 }
  0x6e   :  { %448 = vmatpush2.msra.mxu0 %v309_v48  ;;  %519 = vmatpush2.msra.mxu1 %v373_v49 }
  0x6f   :  { %449 = vmatprep.subr.mxu0 %v308_v50  ;;  %520 = vmatprep.subr.mxu1 %v372_v51  ;;  %p674_p10 = pnand %p673_p9, %p667_p6 }
  0x70   :  { %450 = vmatpush2.msra.mxu0 %v307_v52  ;;  %521 = vmatpush2.msra.mxu1 %v371_v53 }
  0x71   :  { %451 = vmatprep.subr.mxu0 %v306_v54  ;;  %522 = vmatprep.subr.mxu1 %v370_v55 }
  0x72   :  { %452 = vmatpush2.msra.mxu0 %v305_v56  ;;  %523 = vmatpush2.msra.mxu1 %v369_v57 }
  0x73   :  { %453 = vmatprep.subr.mxu0 %v304_v58  ;;  %524 = vmatprep.subr.mxu1 %v368_v59 }
  0x74   :  { %454 = vmatpush2.msra.mxu0 %v303_v60  ;;  %525 = vmatpush2.msra.mxu1 %v367_v61 }
  0x75   :  { %455 = vmatprep.subr.mxu0 %v302_v62  ;;  %526 = vmatprep.subr.mxu1 %v366_v63 }
  0x76   :  { %456 = vmatpush2.msra.mxu0 %v301_v0  ;;  %527 = vmatpush2.msra.mxu1 %v365_v1 }
  0x77   :  { %457 = vmatprep.subr.mxu0 %v300_v2  ;;  %528 = vmatprep.subr.mxu1 %v364_v3 }
  0x78   :  { %458 = vmatpush2.msra.mxu0 %v299_v4  ;;  %529 = vmatpush2.msra.mxu1 %v363_v5 }
  0x79   :  { %459 = vmatprep.subr.mxu0 %v298_v6  ;;  %530 = vmatprep.subr.mxu1 %v362_v7 }
  0x7a   :  { %460 = vmatpush2.msra.mxu0 %v297_v8  ;;  %531 = vmatpush2.msra.mxu1 %v361_v9 }
  0x7b   :  { %461 = vmatprep.subr.mxu0 %v296_v10  ;;  %532 = vmatprep.subr.mxu1 %v360_v11 }
  0x7c   :  { %462 = vmatpush2.msra.mxu0 %v295_v12  ;;  %533 = vmatpush2.msra.mxu1 %v359_v13 }
  0x7d   :  { %463 = vmatprep.subr.mxu0 %v294_v14  ;;  %534 = vmatprep.subr.mxu1 %v358_v15 }
  0x7e   :  { %464 = vmatpush2.msra.mxu0 %v293_v16  ;;  %535 = vmatpush2.msra.mxu1 %v357_v17 }
  0xfe   :  { %v181_v29 = vpop.f32.mrf.mxu0  ;;  %v252_v30 = vpop.f32.mrf.mxu1 }
  0xff   :  { %v253_v31 = vadd.f32 %v252_v30, %v102_v25  ;;  %v182_v32 = vadd.f32 %v181_v29, %v94_v26 }
 0x100   :  { %v183_v33 = vpop.f32.mrf.mxu0  ;;  %v254_v34 = vpop.f32.mrf.mxu1 }
 0x101   :  { %v184_v35 = vadd.f32 %v183_v33, %v98_v27  ;;  %v255_v36 = vadd.f32 %v254_v34, %v106_v28  ;;  %v259_v37 = vmax.f32 %v253_v31, 0.0  ;;  %v257_v40 = vmax.f32 %v182_v32, 0.0 }
 0x103   :  { %v258_v38 = vmax.f32 %v184_v35, 0.0  ;;  %v260_v39 = vmax.f32 %v255_v36, 0.0 }
 0x105   :  { %465 = vmatprep.mubr.f32.mxu0 %v258_v38  ;;  %536 = vmatprep.mubr.f32.mxu1 %v260_v39 }
 0x106   :  { %466 = vmatmul.mubr.f32.vlgmr.msra.gmra.mxu0 %v257_v40  ;;  %537 = vmatmul.mubr.f32.vlgmr.msra.gmra.mxu1 %v259_v37 }
 0x1c6   :  { %v467_v44 = vpop.f32.mrf.mxu0  ;;  %v538_v45 = vpop.f32.mrf.mxu1 }
 0x1c7   :  { %v468_v46 = vadd.f32 %v467_v44, %v394_v42 }
 0x1c8   :  { %v469_v47 = vpop.f32.mrf.mxu0  ;;  %v540_v50 = vpop.f32.mrf.mxu1 }
 0x1c9   :  { %v539_v48 = vadd.f32 %v538_v45, %v468_v46  ;;  %v470_v49 = vadd.f32 %v469_v47, %v398_v43 }
 0x1cb   :  { %v543_v51 = vmul.f32 0.5, %v539_v48  ;;  %v541_v52 = vadd.f32 %v540_v50, %v470_v49 }
 0x1cd   :  { %582 = vtanh.f32 %v543_v51  ;;  %v544_v53 = vmul.f32 0.5, %v541_v52 }
 0x1cf   :  { %584 = vtanh.f32 %v544_v53 }
 0x1da   :  { %v583_v54 = vpop.eup %582 }
 0x1db   :  { %v547_v55 = vmul.f32 0.5, %v583_v54 }
 0x1dc   :  { %v585_v56 = vpop.eup %584 }
 0x1dd   :  { %v548_v57 = vmul.f32 0.5, %v585_v56  ;;  %v549_v58 = vadd.f32 0.5, %v547_v55 }
 0x1df   :  { %v550_v59 = vadd.f32 0.5, %v548_v57  ;;  %551 = vst [vmem:[#allocation10] sm:$0xff] %v549_v58 }
 0x1e1   :  { %552 = vst [vmem:[#allocation10 + $0x8] sm:$0xff] %v550_v59 }
 0x1e2   :  { %677 = shalt.err (!%p674_p10)
}
 0x1e3   :  { %562 = dma.vmem_to_hbm [thread:$0]  %s560_s16, 256, %s757_s5, [#allocation4]  }
 0x1e4   :  { %692 = dma.done.wait [#allocation4], 256  }
 0x1e5   :  { %693 = vsyncadd [#allocation4], 4294967040 }
 0x1e6   :  { %566 = vsyncpa [#allocation3], 1 }
 0x1e7   :  { %567 = vsyncpa [#allocation6], 1 }
 0x1e8   :  { %568 = vsyncpa [#allocation9], 1 }
 0x1e9   :  { %569 = vsyncpa [#allocation4], 1 }

</bundles_post_ra>
